<compile_context>
chip_gen: v7x
topology: tpu7x:2x2x1
jax: 0.10.0
libtpu: 0.0.40
codegen_flags: <defaults>
</compile_context>

<pallas_src>
import jax
import jax.numpy as jnp
from jax.experimental import pallas as pl
from jax.experimental.pallas import tpu as pltpu

D_IN = 768
D_H1 = 768 // 2          # 384  (3 x 128, already lane-aligned)
D_H2 = 768 // 4          # 192
D_H2P = 256              # 192 padded to 2 x 128 (zero columns)
D_OUT = 2
D_OUT_P = 128            # 2 padded to one full lane tile (zero columns)


def triple_classifier_kernel(x_ref, w1_ref, b1_ref, w2_ref, b2_ref,
                             w3_ref, b3_ref, o_ref):
    # fc1 + ReLU  (bf16 x bf16 -> f32 accumulate, bias/ReLU in f32)
    h1 = jnp.dot(x_ref[...], w1_ref[...], preferred_element_type=jnp.float32)
    h1 = jnp.maximum(h1 + b1_ref[...], 0.0)
    # fc2 + ReLU  (zero-padded columns stay exactly zero: 0*w + 0 bias -> ReLU 0)
    h2 = jnp.dot(h1.astype(jnp.bfloat16), w2_ref[...],
                 preferred_element_type=jnp.float32)
    h2 = jnp.maximum(h2 + b2_ref[...], 0.0)
    # fc3 (logits, no activation); padded lanes carry zeros and are sliced off
    # in the wrapper.
    logits = jnp.dot(h2.astype(jnp.bfloat16), w3_ref[...],
                     preferred_element_type=jnp.float32)
    o_ref[...] = (logits + b3_ref[...]).astype(o_ref.dtype)


def _round_up(x, m):
    return ((x + m - 1) // m) * m


def triple_classifier_forward(x, w1, b1, w2, b2, w3, b3, *, tile_b=256):
    """x: [B, 768] float32 CLS embeddings -> [B, 2] float32 logits."""
    B = x.shape[0]

    # Batch tile: large batches use tile_b rows/step; small batches use one
    # sublane-aligned tile.  B is zero-padded up to a multiple of the tile.
    TB = tile_b if B >= tile_b else _round_up(B, 8)
    B_pad = _round_up(B, TB)

    # Activations shipped as bf16 (MXU-native, half the DMA bytes).
    x_p = jnp.zeros((B_pad, D_IN), jnp.bfloat16).at[:B].set(
        x.astype(jnp.bfloat16))

    # Weight prep (host-side, once): bf16 weights, zero-padded to lane-dense
    # shapes; biases stay f32 (added to the f32 accumulator).
    w1b = w1.astype(jnp.bfloat16)                                   # [768, 384]
    b1r = b1.reshape(1, D_H1).astype(jnp.float32)
    w2p = jnp.zeros((D_H1, D_H2P), jnp.bfloat16).at[:, :D_H2].set(
        w2.astype(jnp.bfloat16))                                    # [384, 256]
    b2p = jnp.zeros((1, D_H2P), jnp.float32).at[0, :D_H2].set(
        b2.astype(jnp.float32))
    w3p = jnp.zeros((D_H2P, D_OUT_P), jnp.bfloat16).at[:D_H2, :D_OUT].set(
        w3.astype(jnp.bfloat16))                                    # [256, 128]
    b3p = jnp.zeros((1, D_OUT_P), jnp.float32).at[0, :D_OUT].set(
        b3.astype(jnp.float32))

    # Weights/biases: resident (same block every grid step -> fetched once).
    resident = lambda shape: pl.BlockSpec(shape, lambda i: (0, 0))

    out = pl.pallas_call(
        triple_classifier_kernel,
        out_shape=jax.ShapeDtypeStruct((B_pad, D_OUT_P), jnp.float32),
        grid=(B_pad // TB,),
        in_specs=[
            pl.BlockSpec((TB, D_IN), lambda i: (i, 0)),   # x: tiled over batch
            resident((D_IN, D_H1)),  resident((1, D_H1)),
            resident((D_H1, D_H2P)), resident((1, D_H2P)),
            resident((D_H2P, D_OUT_P)), resident((1, D_OUT_P)),
        ],
        out_specs=pl.BlockSpec((TB, D_OUT_P), lambda i: (i, 0)),
        compiler_params=pltpu.CompilerParams(
            dimension_semantics=("parallel",)),
    )(x_p, w1b, b1r, w2p, b2p, w3p, b3p)

    # Drop batch padding and the lane padding of the logits.
    return out[:B, :D_OUT]


def init_linear_params(key, fan_in, fan_out):
    """Matches torch.nn.Linear's U(-1/sqrt(fan_in), 1/sqrt(fan_in)).
    Weight is stored [fan_in, fan_out] (transposed vs PyTorch)."""
    kw, kb = jax.random.split(key)
    bound = 1.0 / jnp.sqrt(fan_in)
    w = jax.random.uniform(kw, (fan_in, fan_out), jnp.float32, -bound, bound)
    b = jax.random.uniform(kb, (fan_out,), jnp.float32, -bound, bound)
    return w, b


def reference_forward(x, w1, b1, w2, b2, w3, b3):
    h1 = jnp.maximum(x @ w1 + b1, 0.0)
    h2 = jnp.maximum(h1 @ w2 + b2, 0.0)
    return h2 @ w3 + b3


if __name__ == "__main__":
    key = jax.random.PRNGKey(0)
    kx, k1, k2, k3 = jax.random.split(key, 4)

    B = 8  # small batch
    # TODO(synk): the DistilBERT backbone (AutoModel) is not reimplemented;
    # x stands in for the CLS-token embeddings model(tokens)[0][:, 0, :].
    x = jax.random.normal(kx, (B, D_IN), jnp.float32)

    w1, b1 = init_linear_params(k1, D_IN, D_H1)
    w2, b2 = init_linear_params(k2, D_H1, D_H2)
    w3, b3 = init_linear_params(k3, D_H2, D_OUT)

    out = triple_classifier_forward(x, w1, b1, w2, b2, w3, b3)
    out = jax.block_until_ready(out)

    ref = reference_forward(x, w1, b1, w2, b2, w3, b3)
    assert out.shape == (B, D_OUT)
    # bf16 weights/activations feeding the MXU -> loosened tolerance vs the
    # pure-f32 reference.
    assert jnp.allclose(out, ref, atol=5e-2, rtol=5e-2), \
        "mismatch vs JAX reference"

    print("KERNEL_OK")
</pallas_src>

<mosaic_0001>
module attributes {stable_mosaic.version = 11 : i64} {
  func.func @triple_classifier_kernel(%arg0: i32, %arg1: memref<8x768xbf16, #tpu.memory_space<vmem>>, %arg2: memref<768x384xbf16, #tpu.memory_space<vmem>>, %arg3: memref<1x384xf32, #tpu.memory_space<vmem>>, %arg4: memref<384x256xbf16, #tpu.memory_space<vmem>>, %arg5: memref<1x256xf32, #tpu.memory_space<vmem>>, %arg6: memref<256x128xbf16, #tpu.memory_space<vmem>>, %arg7: memref<1x128xf32, #tpu.memory_space<vmem>>, %arg8: memref<8x128xf32, #tpu.memory_space<vmem>>) attributes {dimension_semantics = [#tpu.dimension_semantics<parallel>], iteration_bounds = array<i64: 1>, scalar_prefetch = 0 : i64, scratch_operands = 0 : i64, tpu.core_type = #tpu.core_type<tc>, window_params = [{transform_indices = @transform_0, window_bounds = array<i64: 8, 768>}, {pipeline_mode = #tpu.pipeline_mode<synchronous>, transform_indices = @transform_1, window_bounds = array<i64: 768, 384>}, {pipeline_mode = #tpu.pipeline_mode<synchronous>, transform_indices = @transform_2, window_bounds = array<i64: 1, 384>}, {pipeline_mode = #tpu.pipeline_mode<synchronous>, transform_indices = @transform_3, window_bounds = array<i64: 384, 256>}, {pipeline_mode = #tpu.pipeline_mode<synchronous>, transform_indices = @transform_4, window_bounds = array<i64: 1, 256>}, {pipeline_mode = #tpu.pipeline_mode<synchronous>, transform_indices = @transform_5, window_bounds = array<i64: 256, 128>}, {pipeline_mode = #tpu.pipeline_mode<synchronous>, transform_indices = @transform_6, window_bounds = array<i64: 1, 128>}, {transform_indices = @transform_7, window_bounds = array<i64: 8, 128>}]} {
    %c0 = arith.constant 0 : index
    %c0_0 = arith.constant 0 : index
    %0 = vector.load %arg1[%c0, %c0_0] : memref<8x768xbf16, #tpu.memory_space<vmem>>, vector<8x768xbf16>
    %c0_1 = arith.constant 0 : index
    %c0_2 = arith.constant 0 : index
    %1 = vector.load %arg2[%c0_1, %c0_2] : memref<768x384xbf16, #tpu.memory_space<vmem>>, vector<768x384xbf16>
    %cst = arith.constant dense<0.000000e+00> : vector<8x384xf32>
    %2 = tpu.matmul %0, %1, %cst {dimension_numbers = #tpu.dot_dimension_numbers<[1], [0], [0], [1], [0, 0, 1, 1], [], []>} : vector<8x768xbf16>, vector<768x384xbf16>, vector<8x384xf32> -> vector<8x384xf32>
    %c0_3 = arith.constant 0 : index
    %c0_4 = arith.constant 0 : index
    %3 = vector.load %arg3[%c0_3, %c0_4] : memref<1x384xf32, #tpu.memory_space<vmem>>, vector<1x384xf32>
    %4 = vector.broadcast %3 : vector<1x384xf32> to vector<8x384xf32>
    %5 = arith.addf %2, %4 : vector<8x384xf32>
    %cst_5 = arith.constant 0.000000e+00 : f32
    %6 = vector.broadcast %cst_5 : f32 to vector<8x384xf32>
    %7 = arith.maximumf %5, %6 : vector<8x384xf32>
    %8 = arith.truncf %7 : vector<8x384xf32> to vector<8x384xbf16>
    %c0_6 = arith.constant 0 : index
    %c0_7 = arith.constant 0 : index
    %9 = vector.load %arg4[%c0_6, %c0_7] : memref<384x256xbf16, #tpu.memory_space<vmem>>, vector<384x256xbf16>
    %cst_8 = arith.constant dense<0.000000e+00> : vector<8x256xf32>
    %10 = tpu.matmul %8, %9, %cst_8 {dimension_numbers = #tpu.dot_dimension_numbers<[1], [0], [0], [1], [0, 0, 1, 1], [], []>} : vector<8x384xbf16>, vector<384x256xbf16>, vector<8x256xf32> -> vector<8x256xf32>
    %c0_9 = arith.constant 0 : index
    %c0_10 = arith.constant 0 : index
    %11 = vector.load %arg5[%c0_9, %c0_10] : memref<1x256xf32, #tpu.memory_space<vmem>>, vector<1x256xf32>
    %12 = vector.broadcast %11 : vector<1x256xf32> to vector<8x256xf32>
    %13 = arith.addf %10, %12 : vector<8x256xf32>
    %cst_11 = arith.constant 0.000000e+00 : f32
    %14 = vector.broadcast %cst_11 : f32 to vector<8x256xf32>
    %15 = arith.maximumf %13, %14 : vector<8x256xf32>
    %16 = arith.truncf %15 : vector<8x256xf32> to vector<8x256xbf16>
    %c0_12 = arith.constant 0 : index
    %c0_13 = arith.constant 0 : index
    %17 = vector.load %arg6[%c0_12, %c0_13] : memref<256x128xbf16, #tpu.memory_space<vmem>>, vector<256x128xbf16>
    %cst_14 = arith.constant dense<0.000000e+00> : vector<8x128xf32>
    %18 = tpu.matmul %16, %17, %cst_14 {dimension_numbers = #tpu.dot_dimension_numbers<[1], [0], [0], [1], [0, 0, 1, 1], [], []>} : vector<8x256xbf16>, vector<256x128xbf16>, vector<8x128xf32> -> vector<8x128xf32>
    %c0_15 = arith.constant 0 : index
    %c0_16 = arith.constant 0 : index
    %19 = vector.load %arg7[%c0_15, %c0_16] : memref<1x128xf32, #tpu.memory_space<vmem>>, vector<1x128xf32>
    %20 = vector.broadcast %19 : vector<1x128xf32> to vector<8x128xf32>
    %21 = arith.addf %18, %20 : vector<8x128xf32>
    %c0_17 = arith.constant 0 : index
    %c0_18 = arith.constant 0 : index
    %22 = vector.load %arg8[%c0_17, %c0_18] : memref<8x128xf32, #tpu.memory_space<vmem>>, vector<8x128xf32>
    tpu.vector_store %arg8[%c0_17, %c0_18], %21 {strides = array<i32>} : memref<8x128xf32, #tpu.memory_space<vmem>>, vector<8x128xf32>,
    return
  }
  func.func @transform_0(%arg0: i32) -> (i32, i32) {
    %c0_i32 = arith.constant 0 : i32
    %c0_i32_0 = arith.constant 0 : i32
    return %arg0, %c0_i32 : i32, i32
  }
  func.func @transform_1(%arg0: i32) -> (i32, i32) {
    %c0_i32 = arith.constant 0 : i32
    %c0_i32_0 = arith.constant 0 : i32
    %c0_i32_1 = arith.constant 0 : i32
    return %c0_i32, %c0_i32_0 : i32, i32
  }
  func.func @transform_2(%arg0: i32) -> (i32, i32) {
    %c0_i32 = arith.constant 0 : i32
    %c0_i32_0 = arith.constant 0 : i32
    %c0_i32_1 = arith.constant 0 : i32
    return %c0_i32, %c0_i32_0 : i32, i32
  }
  func.func @transform_3(%arg0: i32) -> (i32, i32) {
    %c0_i32 = arith.constant 0 : i32
    %c0_i32_0 = arith.constant 0 : i32
    %c0_i32_1 = arith.constant 0 : i32
    return %c0_i32, %c0_i32_0 : i32, i32
  }
  func.func @transform_4(%arg0: i32) -> (i32, i32) {
    %c0_i32 = arith.constant 0 : i32
    %c0_i32_0 = arith.constant 0 : i32
    %c0_i32_1 = arith.constant 0 : i32
    return %c0_i32, %c0_i32_0 : i32, i32
  }
  func.func @transform_5(%arg0: i32) -> (i32, i32) {
    %c0_i32 = arith.constant 0 : i32
    %c0_i32_0 = arith.constant 0 : i32
    %c0_i32_1 = arith.constant 0 : i32
    return %c0_i32, %c0_i32_0 : i32, i32
  }
  func.func @transform_6(%arg0: i32) -> (i32, i32) {
    %c0_i32 = arith.constant 0 : i32
    %c0_i32_0 = arith.constant 0 : i32
    %c0_i32_1 = arith.constant 0 : i32
    return %c0_i32, %c0_i32_0 : i32, i32
  }
  func.func @transform_7(%arg0: i32) -> (i32, i32) {
    %c0_i32 = arith.constant 0 : i32
    %c0_i32_0 = arith.constant 0 : i32
    return %arg0, %c0_i32 : i32, i32
  }
}

</mosaic_0001>

<bundles_post_ra>
// kernel: tpu_custom_call.1
= control target key start
LH: loop header
LB: loop body
LE: loop exit
PB: predicated region body
PF: predicated region fallthrough
CT: control target
= control target key end

     0   :  { %12 = vsyncpa [#allocation3], 0  ;;  %s2785_s0 = inlined_call_operand.hbm [shape: bf16[8,768], index: 0, kind: input, shape index: {}]   ;;  %s2786_s1 = inlined_call_operand.hbm [shape: bf16[768,384], index: 1, kind: input, shape index: {}]   ;;  %s2787_s2 = inlined_call_operand.vmem [shape: f32[1,384], index: 2, kind: input, shape index: {}]   ;;  %s2788_s3 = inlined_call_operand.hbm [shape: bf16[384,256], index: 3, kind: input, shape index: {}]   ;;  %s2789_s4 = inlined_call_operand.vmem [shape: f32[1,256], index: 4, kind: input, shape index: {}]   ;;  %s2790_s5 = inlined_call_operand.hbm [shape: bf16[256,128], index: 5, kind: input, shape index: {}]   ;;  %s2791_s6 = inlined_call_operand.vmem [shape: f32[1,128], index: 6, kind: input, shape index: {}]   ;;  %s2792_s7 = inlined_call_operand.hbm [shape: f32[8,128], index: 7, kind: output, shape index: {}]  }
   0x1   :  { %13 = vsyncpa [#allocation6], 0 }
   0x2   :  { %14 = vsyncpa [#allocation9], 0 }
   0x3   :  { %15 = vsyncpa [#allocation4], 0  ;;  %s2645_s24 = smov [#allocation5]   ;;  %s2527_s28 = scalar_lea.hbm %s2786_s1, 18432 }
   0x4   :  { %s31_s25 = sshll.u32 %s2645_s24, 4  ;;  %p2528_p0 = scmp.ne.s32.totalorder %s2786_s1, %s2527_s28  ;;  %s32_s25 = int_to_ptr.vmem [resolvable:$true] %s31_s25 }
   0x5   :  { %p2531_p1 = scmp.lt.u32.totalorder %s2527_s28, %s2786_s1 }
   0x7   :  { %p2533_p2 = pnand %p2531_p1, %p2528_p0 }
   0x9   :  { %2536 = shalt.err (!%p2533_p2)
}
   0xa   :  { %s2537_s10 = scalar_lea.vmem %s32_s25, 18432  ;;  %p2542_p4 = scmp.lt.s32.totalorder %s32_s25, %s32_s25 }
   0xb   :  { %p2538_p3 = scmp.ne.s32.totalorder %s32_s25, %s2537_s10  ;;  %p2543_p5 = scmp.lt.s32.totalorder %s2537_s10, %s2537_s10 }
   0xd   :  { %p2544_p6 = por %p2543_p5, %p2542_p4 }
   0xf   :  { %p2545_p7 = pnand %p2544_p6, %p2538_p3 }
  0x11   :  { %2548 = shalt.err (!%p2545_p7)
}
  0x12   :  { %s2646_s11 = smov 192   ;;  %s2647_s12 = smov 12  }
  0x13   :  { %37 = dma.hbm_to_vmem [thread:$0]  %s2786_s1, 18432, %s32_s25, [#allocation6], %s2646_s11, %s2646_s11, %s2647_s12  }
  0x14   :  { %s2648_s15 = smov [#allocation2]   ;;  %s2649_s17 = smov [#allocation7]  }
  0x15   :  { %s22_s16 = sshll.u32 %s2648_s15, 4  ;;  %s45_s18 = sshll.u32 %s2649_s17, 4  ;;  %s23_s16 = int_to_ptr.vmem [resolvable:$true] %s22_s16  ;;  %s46_s18 = int_to_ptr.vmem [resolvable:$true] %s45_s18 }
  0x16   :  { %s2549_s21 = scalar_lea.hbm %s2785_s0, 384 }
  0x17   :  { %p2550_p8 = scmp.ne.s32.totalorder %s2785_s0, %s2549_s21  ;;  %p2553_p9 = scmp.lt.u32.totalorder %s2549_s21, %s2785_s0 }
  0x19   :  { %p2555_p10 = pnand %p2553_p9, %p2550_p8 }
  0x1b   :  { %2558 = shalt.err (!%p2555_p10)
}
  0x1c   :  { %s2559_s1 = scalar_lea.vmem %s23_s16, 384  ;;  %p2564_p12 = scmp.lt.s32.totalorder %s23_s16, %s23_s16 }
  0x1d   :  { %p2560_p11 = scmp.ne.s32.totalorder %s23_s16, %s2559_s1  ;;  %p2565_p13 = scmp.lt.s32.totalorder %s2559_s1, %s2559_s1 }
  0x1f   :  { %p2566_p0 = por %p2565_p13, %p2564_p12 }
  0x21   :  { %p2567_p1 = pnand %p2566_p0, %p2560_p11 }
  0x23   :  { %2570 = shalt.err (!%p2567_p1)
}
  0x24   :  { %25 = dma.hbm_to_vmem [thread:$0]  %s2785_s0, 384, %s23_s16, [#allocation3]  }
  0x25   :  { %s2571_s30 = scalar_lea.hbm %s2788_s3, 6144 }
  0x26   :  { %p2572_p2 = scmp.ne.s32.totalorder %s2788_s3, %s2571_s30  ;;  %p2575_p3 = scmp.lt.u32.totalorder %s2571_s30, %s2788_s3 }
  0x28   :  { %p2577_p4 = pnand %p2575_p3, %p2572_p2 }
  0x2a   :  { %2580 = shalt.err (!%p2577_p4)
}
  0x2b   :  { %s2581_s12 = scalar_lea.vmem %s46_s18, 6144  ;;  %p2586_p6 = scmp.lt.s32.totalorder %s46_s18, %s46_s18 }
  0x2c   :  { %p2582_p5 = scmp.ne.s32.totalorder %s46_s18, %s2581_s12  ;;  %p2587_p7 = scmp.lt.s32.totalorder %s2581_s12, %s2581_s12 }
  0x2e   :  { %p2588_p8 = por %p2587_p7, %p2586_p6 }
  0x30   :  { %p2589_p9 = pnand %p2588_p8, %p2582_p5 }
  0x32   :  { %2592 = shalt.err (!%p2589_p9)
}
  0x33   :  { %s2650_s0 = smov 128   ;;  %s2651_s13 = smov 8  }
  0x34   :  { %51 = dma.hbm_to_vmem [thread:$0]  %s2788_s3, 6144, %s46_s18, [#allocation6], %s2650_s0, %s2650_s0, %s2651_s13  }
  0x35   :  { %s2652_s16 = smov [#allocation8]   ;;  %s2593_s21 = scalar_lea.hbm %s2790_s5, 2048 }
  0x36   :  { %s59_s17 = sshll.u32 %s2652_s16, 4  ;;  %p2594_p10 = scmp.ne.s32.totalorder %s2790_s5, %s2593_s21  ;;  %s60_s17 = int_to_ptr.vmem [resolvable:$true] %s59_s17 }
  0x37   :  { %p2597_p11 = scmp.lt.u32.totalorder %s2593_s21, %s2790_s5 }
  0x39   :  { %p2599_p12 = pnand %p2597_p11, %p2594_p10 }
  0x3b   :  { %2602 = shalt.err (!%p2599_p12)
}
  0x3c   :  { %s2603_s1 = scalar_lea.vmem %s60_s17, 2048  ;;  %p2608_p0 = scmp.lt.s32.totalorder %s60_s17, %s60_s17 }
  0x3d   :  { %p2604_p13 = scmp.ne.s32.totalorder %s60_s17, %s2603_s1  ;;  %p2609_p1 = scmp.lt.s32.totalorder %s2603_s1, %s2603_s1 }
  0x3f   :  { %p2610_p2 = por %p2609_p1, %p2608_p0 }
  0x41   :  { %p2611_p3 = pnand %p2610_p2, %p2604_p13 }
  0x43   :  { %2614 = shalt.err (!%p2611_p3)
}
  0x44   :  { %s2653_s3 = smov 64   ;;  %s2654_s18 = smov 4  }
  0x45   :  { %65 = dma.hbm_to_vmem [thread:$0]  %s2790_s5, 2048, %s60_s17, [#allocation9], %s2653_s3, %s2653_s3, %s2654_s18  }
  0x46   :  { %2637 = dma.done.wait [#allocation3], 384  }
  0x47   :  { %2638 = vsyncadd [#allocation3], 4294966912 }
  0x48   :  { %2639 = dma.done.wait [#allocation6], 24576  }
  0x49   :  { %2640 = vsyncadd [#allocation6], 4294942720 }
  0x4a   :  { %2641 = dma.done.wait [#allocation9], 2048  }
  0x4b   :  { %2642 = vsyncadd [#allocation9], 4294965248  ;;  %v2241_v0 = vld [vmem:[#allocation5 + $0x4] ss:$12 sps:$4 sm:$0xff]   ;;  %v2243_v1 = vld [vmem:[#allocation5] ss:$12 sps:$4 sm:$0xff]  }
  0x4c   :  { %1082 = vmatprep.subr.bf16.mxu0 %v2241_v0  ;;  %v2244_v2 = vld [vmem:[#allocation5 + $0x1c] ss:$12 sps:$4 sm:$0xff]   ;;  %v2246_v3 = vld [vmem:[#allocation5 + $0x18] ss:$12 sps:$4 sm:$0xff]   ;;  %v2247_v4 = vld [vmem:[#allocation5 + $0x34] ss:$12 sps:$4 sm:$0xff]  }
  0x4d   :  { %1083 = vmatpush1.bf16.msra.mxu0 %v2243_v1  ;;  %v2249_v5 = vld [vmem:[#allocation5 + $0x30] ss:$12 sps:$4 sm:$0xff]   ;;  %v2250_v6 = vld [vmem:[#allocation5 + $0x4c] ss:$12 sps:$4 sm:$0xff]   ;;  %v2252_v7 = vld [vmem:[#allocation5 + $0x48] ss:$12 sps:$4 sm:$0xff]  }
  0x4e   :  { %1084 = vmatprep.subr.bf16.mxu0 %v2244_v2  ;;  %v2253_v8 = vld [vmem:[#allocation5 + $0x64] ss:$12 sps:$4 sm:$0xff]   ;;  %v2255_v9 = vld [vmem:[#allocation5 + $0x60] ss:$12 sps:$4 sm:$0xff]   ;;  %v2256_v10 = vld [vmem:[#allocation5 + $0x7c] ss:$12 sps:$4 sm:$0xff]  }
  0x4f   :  { %v2258_v11 = vld [vmem:[#allocation5 + $0x78] ss:$12 sps:$4 sm:$0xff]   ;;  %v2259_v12 = vld [vmem:[#allocation5 + $0x94] ss:$12 sps:$4 sm:$0xff]   ;;  %v2745_v13 = vld [vmem:[#allocation2] sm:$0xff] }
  0x50   :  { %v2261_v14 = vld [vmem:[#allocation5 + $0x90] ss:$12 sps:$4 sm:$0xff]   ;;  %v2262_v15 = vld [vmem:[#allocation5 + $0xac] ss:$12 sps:$4 sm:$0xff]   ;;  %v1911_v16 = vcombine.high %v2745_v13, %v2745_v13  ;;  %v2294_v17 = vld [vmem:[#allocation5 + $0xc8] ss:$12 sps:$4 sm:$0xff]   ;;  %v1910_v50 = vcombine.low %v2745_v13, %v2745_v13 }
  0x51   :  { %1085 = vmatpush1.bf16.msra.mxu0 %v2246_v3  ;;  %v2295_v18 = vld [vmem:[#allocation5 + $0x8] ss:$12 sps:$4 sm:$0xff]   ;;  %2125 = vmatprep.subr.bf16.mxu1 %v2294_v17  ;;  %v2265_v20 = vld [vmem:[#allocation5 + $0xc4] ss:$12 sps:$4 sm:$0xff]   ;;  %v2299_v21 = vld [vmem:[#allocation5 + $0xe0] ss:$12 sps:$4 sm:$0xff]  }
  0x52   :  { %1086 = vmatprep.subr.bf16.mxu0 %v2247_v4  ;;  %1114 = vmatprep.mubr.bf16.mxu0 %v1911_v16  ;;  %v2264_v19 = vld [vmem:[#allocation5 + $0xa8] ss:$12 sps:$4 sm:$0xff]   ;;  %v2300_v22 = vld [vmem:[#allocation5 + $0x20] ss:$12 sps:$4 sm:$0xff]   ;;  %v2304_v24 = vld [vmem:[#allocation5 + $0xf8] ss:$12 sps:$4 sm:$0xff]  }
  0x53   :  { %1237 = vmatprep.mubr.bf16.mxu1 %v1911_v16  ;;  %2126 = vmatpush3.bf16.msra.mxu1 %v2295_v18  ;;  %v2267_v23 = vld [vmem:[#allocation5 + $0xc0] ss:$12 sps:$4 sm:$0xff]   ;;  %v2305_v25 = vld [vmem:[#allocation5 + $0x38] ss:$12 sps:$4 sm:$0xff]   ;;  %v2268_v26 = vld [vmem:[#allocation5 + $0xdc] ss:$12 sps:$4 sm:$0xff]  }
  0x54   :  { %2127 = vmatprep.subr.bf16.mxu1 %v2299_v21  ;;  %v2309_v27 = vld [vmem:[#allocation5 + $0x110] ss:$12 sps:$4 sm:$0xff]   ;;  %v2270_v29 = vld [vmem:[#allocation5 + $0xd8] ss:$12 sps:$4 sm:$0xff]   ;;  %v2271_v30 = vld [vmem:[#allocation5 + $0xf4] ss:$12 sps:$4 sm:$0xff]  }
  0x55   :  { %1087 = vmatpush1.bf16.msra.mxu0 %v2249_v5  ;;  %v2310_v28 = vld [vmem:[#allocation5 + $0x50] ss:$12 sps:$4 sm:$0xff]   ;;  %v2314_v31 = vld [vmem:[#allocation5 + $0x128] ss:$12 sps:$4 sm:$0xff]   ;;  %v2274_v34 = vld [vmem:[#allocation5 + $0x10c] ss:$12 sps:$4 sm:$0xff]  }
  0x56   :  { %1088 = vmatprep.subr.bf16.mxu0 %v2250_v6  ;;  %v2315_v32 = vld [vmem:[#allocation5 + $0x68] ss:$12 sps:$4 sm:$0xff]   ;;  %v2273_v33 = vld [vmem:[#allocation5 + $0xf0] ss:$12 sps:$4 sm:$0xff]   ;;  %v2319_v35 = vld [vmem:[#allocation5 + $0x140] ss:$12 sps:$4 sm:$0xff]  }
  0x57   :  { %2128 = vmatpush3.bf16.msra.mxu1 %v2300_v22  ;;  %v2276_v36 = vld [vmem:[#allocation5 + $0x108] ss:$12 sps:$4 sm:$0xff]   ;;  %v2320_v37 = vld [vmem:[#allocation5 + $0x80] ss:$12 sps:$4 sm:$0xff]   ;;  %v2324_v38 = vld [vmem:[#allocation5 + $0x158] ss:$12 sps:$4 sm:$0xff]  }
  0x58   :  { %2129 = vmatprep.subr.bf16.mxu1 %v2304_v24  ;;  %v2277_v39 = vld [vmem:[#allocation5 + $0x124] ss:$12 sps:$4 sm:$0xff]   ;;  %v2279_v40 = vld [vmem:[#allocation5 + $0x120] ss:$12 sps:$4 sm:$0xff]   ;;  %v2280_v43 = vld [vmem:[#allocation5 + $0x13c] ss:$12 sps:$4 sm:$0xff]  }
  0x59   :  { %1089 = vmatpush1.bf16.msra.mxu0 %v2252_v7  ;;  %v2325_v41 = vld [vmem:[#allocation5 + $0x98] ss:$12 sps:$4 sm:$0xff]   ;;  %v2329_v42 = vld [vmem:[#allocation5 + $0x170] ss:$12 sps:$4 sm:$0xff]   ;;  %v2334_v46 = vld [vmem:[#allocation5 + $0x248] ss:$12 sps:$4 sm:$0xff]  }
  0x5a   :  { %1090 = vmatprep.subr.bf16.mxu0 %v2253_v8  ;;  %v2282_v44 = vld [vmem:[#allocation5 + $0x138] ss:$12 sps:$4 sm:$0xff]   ;;  %v2330_v45 = vld [vmem:[#allocation5 + $0xb0] ss:$12 sps:$4 sm:$0xff]   ;;  %v2283_v47 = vld [vmem:[#allocation5 + $0x154] ss:$12 sps:$4 sm:$0xff]  }
  0x5b   :  { %2130 = vmatpush3.bf16.msra.mxu1 %v2305_v25  ;;  %v2285_v48 = vld [vmem:[#allocation5 + $0x150] ss:$12 sps:$4 sm:$0xff]   ;;  %v2335_v49 = vld [vmem:[#allocation5 + $0x188] ss:$12 sps:$4 sm:$0xff]   ;;  %v2339_v51 = vld [vmem:[#allocation5 + $0x260] ss:$12 sps:$4 sm:$0xff]  }
  0x5c   :  { %2131 = vmatprep.subr.bf16.mxu1 %v2309_v27  ;;  %v2286_v52 = vld [vmem:[#allocation5 + $0x16c] ss:$12 sps:$4 sm:$0xff]   ;;  %v2288_v54 = vld [vmem:[#allocation5 + $0x168] ss:$12 sps:$4 sm:$0xff]   ;;  %v2293_v56 = vld [vmem:[#allocation5 + $0x184] ss:$12 sps:$4 sm:$0xff]  }
  0x5d   :  { %1091 = vmatpush1.bf16.msra.mxu0 %v2255_v9  ;;  %v2340_v53 = vld [vmem:[#allocation5 + $0x1a0] ss:$12 sps:$4 sm:$0xff]   ;;  %v2344_v55 = vld [vmem:[#allocation5 + $0x278] ss:$12 sps:$4 sm:$0xff]   ;;  %v2349_v59 = vld [vmem:[#allocation5 + $0x290] ss:$12 sps:$4 sm:$0xff]  }
  0x5e   :  { %1092 = vmatprep.subr.bf16.mxu0 %v2256_v10  ;;  %v2291_v57 = vld [vmem:[#allocation5 + $0x180] ss:$12 sps:$4 sm:$0xff]   ;;  %v2345_v58 = vld [vmem:[#allocation5 + $0x1b8] ss:$12 sps:$4 sm:$0xff]   ;;  %v2298_v60 = vld [vmem:[#allocation5 + $0x19c] ss:$12 sps:$4 sm:$0xff]  }
  0x5f   :  { %2132 = vmatpush3.bf16.msra.mxu1 %v2310_v28  ;;  %v2296_v61 = vld [vmem:[#allocation5 + $0x198] ss:$12 sps:$4 sm:$0xff]   ;;  %v2350_v62 = vld [vmem:[#allocation5 + $0x1d0] ss:$12 sps:$4 sm:$0xff]   ;;  %v2354_v63 = vld [vmem:[#allocation5 + $0x2a8] ss:$12 sps:$4 sm:$0xff]  }
  0x60   :  { %2133 = vmatprep.subr.bf16.mxu1 %v2314_v31  ;;  %v2303_v0 = vld [vmem:[#allocation5 + $0x1b4] ss:$12 sps:$4 sm:$0xff]   ;;  %v2301_v1 = vld [vmem:[#allocation5 + $0x1b0] ss:$12 sps:$4 sm:$0xff]   ;;  %v2308_v4 = vld [vmem:[#allocation5 + $0x1cc] ss:$12 sps:$4 sm:$0xff]  }
  0x61   :  { %1093 = vmatpush1.bf16.msra.mxu0 %v2258_v11  ;;  %v2355_v2 = vld [vmem:[#allocation5 + $0x1e8] ss:$12 sps:$4 sm:$0xff]   ;;  %v2359_v3 = vld [vmem:[#allocation5 + $0x2c0] ss:$12 sps:$4 sm:$0xff]   ;;  %v2364_v7 = vld [vmem:[#allocation5 + $0x2d8] ss:$12 sps:$4 sm:$0xff]  }
  0x62   :  { %1094 = vmatprep.subr.bf16.mxu0 %v2259_v12  ;;  %v2306_v5 = vld [vmem:[#allocation5 + $0x1c8] ss:$12 sps:$4 sm:$0xff]   ;;  %v2360_v6 = vld [vmem:[#allocation5 + $0x200] ss:$12 sps:$4 sm:$0xff]   ;;  %v2313_v9 = vld [vmem:[#allocation5 + $0x1e4] ss:$12 sps:$4 sm:$0xff]  }
  0x63   :  { %2134 = vmatpush3.bf16.msra.mxu1 %v2315_v32  ;;  %v82_v8 = vld [vmem:[#allocation2 + $0x8] sm:$0xff]  ;;  %v2365_v11 = vld [vmem:[#allocation5 + $0x218] ss:$12 sps:$4 sm:$0xff]   ;;  %v2311_v12 = vld [vmem:[#allocation5 + $0x1e0] ss:$12 sps:$4 sm:$0xff]  }
  0x64   :  { %2135 = vmatprep.subr.bf16.mxu1 %v2319_v35  ;;  %v1913_v10 = vcombine.high %v82_v8, %v82_v8  ;;  %v2369_v13 = vld [vmem:[#allocation5 + $0x2f0] ss:$12 sps:$4 sm:$0xff]   ;;  %v2376_v17 = vld [vmem:[#allocation5 + $0x3c8] ss:$12 sps:$4 sm:$0xff]   ;;  %v2751_v21 = vcombine.low %v82_v8, %v82_v8  ;;  %v2381_v22 = vld [vmem:[#allocation5 + $0x3e0] ss:$12 sps:$4 sm:$0xff]  }
  0x65   :  { %1095 = vmatpush1.bf16.msra.mxu0 %v2261_v14  ;;  %v2318_v14 = vld [vmem:[#allocation5 + $0x1fc] ss:$12 sps:$4 sm:$0xff]   ;;  %v2323_v18 = vld [vmem:[#allocation5 + $0x214] ss:$12 sps:$4 sm:$0xff]   ;;  %v2333_v27 = vld [vmem:[#allocation5 + $0x244] ss:$12 sps:$4 sm:$0xff]  }
  0x66   :  { %1096 = vmatprep.subr.bf16.mxu0 %v2262_v15  ;;  %v2316_v15 = vld [vmem:[#allocation5 + $0x1f8] ss:$12 sps:$4 sm:$0xff]   ;;  %v2370_v16 = vld [vmem:[#allocation5 + $0x230] ss:$12 sps:$4 sm:$0xff]   ;;  %v2326_v24 = vld [vmem:[#allocation5 + $0x228] ss:$12 sps:$4 sm:$0xff]  }
  0x67   :  { %2136 = vmatpush3.bf16.msra.mxu1 %v2320_v37  ;;  %v2382_v25 = vld [vmem:[#allocation5 + $0x320] ss:$12 sps:$4 sm:$0xff]   ;;  %v2338_v31 = vld [vmem:[#allocation5 + $0x25c] ss:$12 sps:$4 sm:$0xff]  }
  0x68   :  { %2137 = vmatprep.subr.bf16.mxu1 %v2324_v38  ;;  %v2331_v28 = vld [vmem:[#allocation5 + $0x240] ss:$12 sps:$4 sm:$0xff]   ;;  %v2392_v32 = vld [vmem:[#allocation5 + $0x350] ss:$12 sps:$4 sm:$0xff]   ;;  %v2397_v37 = vld [vmem:[#allocation5 + $0x368] ss:$12 sps:$4 sm:$0xff]  }
  0x69   :  { %1097 = vmatpush1.bf16.msra.mxu0 %v2264_v19  ;;  %v2321_v19 = vld [vmem:[#allocation5 + $0x210] ss:$12 sps:$4 sm:$0xff]   ;;  %v2343_v35 = vld [vmem:[#allocation5 + $0x274] ss:$12 sps:$4 sm:$0xff]  }
  0x6a   :  { %1098 = vmatprep.subr.bf16.mxu0 %v2265_v20  ;;  %v2377_v20 = vld [vmem:[#allocation5 + $0x308] ss:$12 sps:$4 sm:$0xff]   ;;  %v2401_v38 = vld [vmem:[#allocation5 + $0x440] ss:$12 sps:$4 sm:$0xff]   ;;  %v2383_v8 = vld [vmem:[#allocation5 + $0x330] ss:$12 sps:$4 sm:$0xff]  }
  0x6b   :  { %2138 = vmatpush3.bf16.msra.mxu1 %v2325_v41 }
  0x6c   :  { %2139 = vmatprep.subr.bf16.mxu1 %v2329_v42  ;;  %v2402_v42 = vld [vmem:[#allocation5 + $0x380] ss:$12 sps:$4 sm:$0xff]  }
  0x6d   :  { %1099 = vmatpush1.bf16.msra.mxu0 %v2267_v23  ;;  %v2328_v23 = vld [vmem:[#allocation5 + $0x22c] ss:$12 sps:$4 sm:$0xff]  }
  0x6e   :  { %1100 = vmatprep.subr.bf16.mxu0 %v2268_v26  ;;  %v2386_v26 = vld [vmem:[#allocation5 + $0x3f8] ss:$12 sps:$4 sm:$0xff]  }
  0x6f   :  { %2140 = vmatpush3.bf16.msra.mxu1 %v2330_v45  ;;  %v2353_v45 = vld [vmem:[#allocation5 + $0x2a4] ss:$12 sps:$4 sm:$0xff]  }
  0x70   :  { %2147 = vmatprep.subr.bf16.mxu1 %v2334_v46  ;;  %v2407_v46 = vld [vmem:[#allocation5 + $0x398] ss:$12 sps:$4 sm:$0xff]  }
  0x71   :  { %1101 = vmatpush1.bf16.msra.mxu0 %v2270_v29  ;;  %v2387_v29 = vld [vmem:[#allocation5 + $0x338] ss:$12 sps:$4 sm:$0xff]  }
  0x72   :  { %1102 = vmatprep.subr.bf16.mxu0 %v2271_v30  ;;  %1238 = vmatmul.mubr.bf16.vlgmr.msra.gmra.mrb[0].mxu1 %v1910_v50  ;;  %v2391_v30 = vld [vmem:[#allocation5 + $0x410] ss:$12 sps:$4 sm:$0xff]  }
  0x73   :  { %2148 = vmatpush3.bf16.msra.mxu1 %v2335_v49  ;;  %1277 = vmatprep.mubr.bf16.mxu1 %v1913_v10  ;;  %v2358_v49 = vld [vmem:[#allocation5 + $0x2bc] ss:$12 sps:$4 sm:$0xff]  }
  0x74   :  { %2149 = vmatprep.subr.bf16.mxu1 %v2339_v51  ;;  %v2356_v51 = vld [vmem:[#allocation5 + $0x2b8] ss:$12 sps:$4 sm:$0xff]  }
  0x75   :  { %1103 = vmatpush1.bf16.msra.mxu0 %v2273_v33  ;;  %v2336_v33 = vld [vmem:[#allocation5 + $0x258] ss:$12 sps:$4 sm:$0xff]  }
  0x76   :  { %1104 = vmatprep.subr.bf16.mxu0 %v2274_v34  ;;  %v2396_v34 = vld [vmem:[#allocation5 + $0x428] ss:$12 sps:$4 sm:$0xff]  }
  0x77   :  { %2150 = vmatpush3.bf16.msra.mxu1 %v2340_v53  ;;  %v2363_v53 = vld [vmem:[#allocation5 + $0x2d4] ss:$12 sps:$4 sm:$0xff]  }
  0x78   :  { %2151 = vmatprep.subr.bf16.mxu1 %v2344_v55 }
  0x79   :  { %1105 = vmatpush1.bf16.msra.mxu0 %v2276_v36  ;;  %v2341_v36 = vld [vmem:[#allocation5 + $0x270] ss:$12 sps:$4 sm:$0xff]  }
  0x7a   :  { %1106 = vmatprep.subr.bf16.mxu0 %v2277_v39  ;;  %v83_v39 = vld [vmem:[#allocation2 + $0x10] sm:$0xff] }
  0x7b   :  { %2152 = vmatpush3.bf16.msra.mxu1 %v2345_v58  ;;  %v1915_v41 = vcombine.high %v83_v39, %v83_v39  ;;  %v2754_v55 = vcombine.low %v83_v39, %v83_v39  ;;  %v2444_v58 = vld [vmem:[#allocation7 + $0x14] ss:$8 sps:$4 sm:$0xff]   ;;  %v2460_v39 = vld [vmem:[#allocation7 + $0x70] ss:$8 sps:$4 sm:$0xff]  }
  0x7c   :  { %2153 = vmatprep.subr.bf16.mxu1 %v2349_v59  ;;  %v2442_v59 = vld [vmem:[#allocation7 + $0x10] ss:$8 sps:$4 sm:$0xff]  }
  0x7d   :  { %1107 = vmatpush1.bf16.msra.mxu0 %v2279_v40  ;;  %v2348_v40 = vld [vmem:[#allocation5 + $0x28c] ss:$12 sps:$4 sm:$0xff]  }
  0x7e   :  { %1108 = vmatprep.subr.bf16.mxu0 %v2280_v43  ;;  %v2346_v43 = vld [vmem:[#allocation5 + $0x288] ss:$12 sps:$4 sm:$0xff]  }
  0x7f   :  { %2154 = vmatpush3.bf16.msra.mxu1 %v2350_v62  ;;  %v2375_v62 = vld [vmem:[#allocation5 + $0x304] ss:$12 sps:$4 sm:$0xff]  }
  0x80   :  { %2155 = vmatprep.subr.bf16.mxu1 %v2354_v63  ;;  %v2445_v63 = vld [vmem:[#allocation7 + $0x20] ss:$8 sps:$4 sm:$0xff]  }
  0x81   :  { %1109 = vmatpush1.bf16.msra.mxu0 %v2282_v44  ;;  %v2406_v44 = vld [vmem:[#allocation5 + $0x458] ss:$12 sps:$4 sm:$0xff]  }
  0x82   :  { %1110 = vmatprep.subr.bf16.mxu0 %v2283_v47  ;;  %v2351_v47 = vld [vmem:[#allocation5 + $0x2a0] ss:$12 sps:$4 sm:$0xff]  }
  0x83   :  { %2156 = vmatpush3.bf16.msra.mxu1 %v2355_v2  ;;  %v2450_v2 = vld [vmem:[#allocation7 + $0x34] ss:$8 sps:$4 sm:$0xff]  }
  0x84   :  { %2157 = vmatprep.subr.bf16.mxu1 %v2359_v3  ;;  %v2448_v3 = vld [vmem:[#allocation7 + $0x30] ss:$8 sps:$4 sm:$0xff]  }
  0x85   :  { %1111 = vmatpush1.bf16.msra.mxu0 %v2285_v48  ;;  %v2411_v48 = vld [vmem:[#allocation5 + $0x470] ss:$12 sps:$4 sm:$0xff]  }
  0x86   :  { %1112 = vmatprep.subr.bf16.mxu0 %v2286_v52  ;;  %v2441_v52 = vld [vmem:[#allocation7 + $0x4] ss:$8 sps:$4 sm:$0xff]  }
  0x87   :  { %2158 = vmatpush3.bf16.msra.mxu1 %v2360_v6  ;;  %v2385_v6 = vld [vmem:[#allocation5 + $0x334] ss:$12 sps:$4 sm:$0xff]  }
  0x88   :  { %2159 = vmatprep.subr.bf16.mxu1 %v2364_v7  ;;  %v2451_v7 = vld [vmem:[#allocation7 + $0x40] ss:$8 sps:$4 sm:$0xff]  }
  0x89   :  { %1113 = vmatpush1.bf16.msra.mxu0 %v2288_v54  ;;  %v2361_v54 = vld [vmem:[#allocation5 + $0x2d0] ss:$12 sps:$4 sm:$0xff]  }
  0x8a   :  { %1123 = vmatprep.subr.bf16.mxu0 %v2293_v56  ;;  %v2439_v56 = vld [vmem:[#allocation7] ss:$8 sps:$4 sm:$0xff]  }
  0x8b   :  { %2160 = vmatpush3.bf16.msra.mxu1 %v2365_v11  ;;  %v2395_v11 = vld [vmem:[#allocation5 + $0x364] ss:$12 sps:$4 sm:$0xff]  }
  0x8c   :  { %1115 = vmatmul.mubr.bf16.vlgmr.msra.gmra.mrb[0].mxu0 %v1910_v50  ;;  %2161 = vmatprep.subr.bf16.mxu1 %v2369_v13  ;;  %v2412_v50 = vld [vmem:[#allocation5 + $0x3b0] ss:$12 sps:$4 sm:$0xff]  }
  0x8d   :  { %1124 = vmatpush1.bf16.msra.mxu0 %v2291_v57  ;;  %1155 = vmatprep.mubr.bf16.mxu0 %v1913_v10  ;;  %v2368_v57 = vld [vmem:[#allocation5 + $0x2ec] ss:$12 sps:$4 sm:$0xff]   ;;  %v2388_v10 = vld [vmem:[#allocation5 + $0x348] ss:$12 sps:$4 sm:$0xff]  }
  0x8e   :  { %1125 = vmatprep.subr.bf16.mxu0 %v2298_v60  ;;  %v2366_v60 = vld [vmem:[#allocation5 + $0x2e8] ss:$12 sps:$4 sm:$0xff]  }
  0x8f   :  { %2162 = vmatpush3.bf16.msra.mxu1 %v2370_v16  ;;  %v2400_v13 = vld [vmem:[#allocation5 + $0x37c] ss:$12 sps:$4 sm:$0xff]   ;;  %v2398_v16 = vld [vmem:[#allocation5 + $0x378] ss:$12 sps:$4 sm:$0xff]  }
  0x90   :  { %2169 = vmatprep.subr.bf16.mxu1 %v2376_v17  ;;  %v2405_v17 = vld [vmem:[#allocation5 + $0x394] ss:$12 sps:$4 sm:$0xff]  }
  0x91   :  { %1126 = vmatpush1.bf16.msra.mxu0 %v2296_v61  ;;  %v2447_v61 = vld [vmem:[#allocation7 + $0x24] ss:$8 sps:$4 sm:$0xff]  }
  0x92   :  { %1127 = vmatprep.subr.bf16.mxu0 %v2303_v0  ;;  %1278 = vmatmul.mubr.bf16.vlgmr.msra.gmra.mrb[4].mxu1 %v2751_v21  ;;  %v2373_v0 = vld [vmem:[#allocation5 + $0x300] ss:$12 sps:$4 sm:$0xff]  }
  0x93   :  { %2170 = vmatpush3.bf16.msra.mxu1 %v2377_v20  ;;  %1317 = vmatprep.mubr.bf16.mxu1 %v1915_v41  ;;  %v2408_v20 = vld [vmem:[#allocation5 + $0x3a8] ss:$12 sps:$4 sm:$0xff]  }
  0x94   :  { %2171 = vmatprep.subr.bf16.mxu1 %v2381_v22  ;;  %v2413_v22 = vld [vmem:[#allocation5 + $0x3c0] ss:$12 sps:$4 sm:$0xff]  }
  0x95   :  { %1128 = vmatpush1.bf16.msra.mxu0 %v2301_v1  ;;  %v2380_v1 = vld [vmem:[#allocation5 + $0x31c] ss:$12 sps:$4 sm:$0xff]  }
  0x96   :  { %1129 = vmatprep.subr.bf16.mxu0 %v2308_v4  ;;  %v2378_v4 = vld [vmem:[#allocation5 + $0x318] ss:$12 sps:$4 sm:$0xff]  }
  0x97   :  { %2172 = vmatpush3.bf16.msra.mxu1 %v2382_v25  ;;  %v2423_v25 = vld [vmem:[#allocation5 + $0x3f4] ss:$12 sps:$4 sm:$0xff]  }
  0x98   :  { %2173 = vmatprep.subr.bf16.mxu1 %v2386_v26  ;;  %v2421_v26 = vld [vmem:[#allocation5 + $0x3f0] ss:$12 sps:$4 sm:$0xff]  }
  0x99   :  { %1130 = vmatpush1.bf16.msra.mxu0 %v2306_v5  ;;  %v2453_v5 = vld [vmem:[#allocation7 + $0x44] ss:$8 sps:$4 sm:$0xff]  }
  0x9a   :  { %1131 = vmatprep.subr.bf16.mxu0 %v2313_v9  ;;  %v2390_v9 = vld [vmem:[#allocation5 + $0x34c] ss:$12 sps:$4 sm:$0xff]  }
  0x9b   :  { %2174 = vmatpush3.bf16.msra.mxu1 %v2387_v29  ;;  %v2429_v29 = vld [vmem:[#allocation5 + $0x424] ss:$12 sps:$4 sm:$0xff]  }
  0x9c   :  { %2175 = vmatprep.subr.bf16.mxu1 %v2391_v30  ;;  %v2427_v30 = vld [vmem:[#allocation5 + $0x420] ss:$12 sps:$4 sm:$0xff]  }
  0x9d   :  { %1132 = vmatpush1.bf16.msra.mxu0 %v2311_v12  ;;  %v2393_v12 = vld [vmem:[#allocation5 + $0x360] ss:$12 sps:$4 sm:$0xff]  }
  0x9e   :  { %1133 = vmatprep.subr.bf16.mxu0 %v2318_v14  ;;  %v2454_v14 = vld [vmem:[#allocation7 + $0x50] ss:$8 sps:$4 sm:$0xff]  }
  0x9f   :  { %2176 = vmatpush3.bf16.msra.mxu1 %v2392_v32  ;;  %v2457_v32 = vld [vmem:[#allocation7 + $0x60] ss:$8 sps:$4 sm:$0xff]  }
  0xa0   :  { %2177 = vmatprep.subr.bf16.mxu1 %v2396_v34  ;;  %v2430_v34 = vld [vmem:[#allocation5 + $0x438] ss:$12 sps:$4 sm:$0xff]  }
  0xa1   :  { %1134 = vmatpush1.bf16.msra.mxu0 %v2316_v15  ;;  %v2456_v15 = vld [vmem:[#allocation7 + $0x54] ss:$8 sps:$4 sm:$0xff]  }
  0xa2   :  { %1135 = vmatprep.subr.bf16.mxu0 %v2323_v18  ;;  %v2403_v18 = vld [vmem:[#allocation5 + $0x390] ss:$12 sps:$4 sm:$0xff]  }
  0xa3   :  { %2178 = vmatpush3.bf16.msra.mxu1 %v2397_v37  ;;  %v2438_v37 = vld [vmem:[#allocation5 + $0x46c] ss:$12 sps:$4 sm:$0xff]  }
  0xa4   :  { %2179 = vmatprep.subr.bf16.mxu1 %v2401_v38  ;;  %v2436_v38 = vld [vmem:[#allocation5 + $0x468] ss:$12 sps:$4 sm:$0xff]  }
  0xa5   :  { %1136 = vmatpush1.bf16.msra.mxu0 %v2321_v19  ;;  %v2410_v19 = vld [vmem:[#allocation5 + $0x3ac] ss:$12 sps:$4 sm:$0xff]  }
  0xa6   :  { %1137 = vmatprep.subr.bf16.mxu0 %v2328_v23  ;;  %v2420_v23 = vld [vmem:[#allocation5 + $0x3dc] ss:$12 sps:$4 sm:$0xff]  }
  0xa7   :  { %2180 = vmatpush3.bf16.msra.mxu1 %v2402_v42  ;;  %v2463_v42 = vld [vmem:[#allocation7 + $0x80] ss:$8 sps:$4 sm:$0xff]  }
  0xa8   :  { %2181 = vmatprep.subr.bf16.mxu1 %v2406_v44  ;;  %v2466_v44 = vld [vmem:[#allocation7 + $0x90] ss:$8 sps:$4 sm:$0xff]  }
  0xa9   :  { %1138 = vmatpush1.bf16.msra.mxu0 %v2326_v24  ;;  %v2418_v24 = vld [vmem:[#allocation5 + $0x3d8] ss:$12 sps:$4 sm:$0xff]  }
  0xaa   :  { %1139 = vmatprep.subr.bf16.mxu0 %v2333_v27  ;;  %v2426_v27 = vld [vmem:[#allocation5 + $0x40c] ss:$12 sps:$4 sm:$0xff]  }
  0xab   :  { %2182 = vmatpush3.bf16.msra.mxu1 %v2407_v46  ;;  %v2469_v46 = vld [vmem:[#allocation7 + $0xa0] ss:$8 sps:$4 sm:$0xff]  }
  0xac   :  { %2183 = vmatprep.subr.bf16.mxu1 %v2411_v48  ;;  %v2472_v48 = vld [vmem:[#allocation7 + $0xb0] ss:$8 sps:$4 sm:$0xff]  }
  0xad   :  { %1140 = vmatpush1.bf16.msra.mxu0 %v2331_v28  ;;  %v2424_v28 = vld [vmem:[#allocation5 + $0x408] ss:$12 sps:$4 sm:$0xff]  }
  0xae   :  { %1141 = vmatprep.subr.bf16.mxu0 %v2338_v31  ;;  %v2432_v31 = vld [vmem:[#allocation5 + $0x43c] ss:$12 sps:$4 sm:$0xff]  }
  0xaf   :  { %2184 = vmatpush3.bf16.msra.mxu1 %v2412_v50  ;;  %v2475_v50 = vld [vmem:[#allocation7 + $0xc0] ss:$8 sps:$4 sm:$0xff]  }
  0xb0   :  { %1631 = vmatprep.subr.bf16.mxu1 %v2441_v52  ;;  %v2478_v52 = vld [vmem:[#allocation7 + $0xd0] ss:$8 sps:$4 sm:$0xff]  }
  0xb1   :  { %1142 = vmatpush1.bf16.msra.mxu0 %v2336_v33  ;;  %v2459_v33 = vld [vmem:[#allocation7 + $0x64] ss:$8 sps:$4 sm:$0xff]  }
  0xb2   :  { %1143 = vmatprep.subr.bf16.mxu0 %v2343_v35  ;;  %1318 = vmatmul.mubr.bf16.vlgmr.msra.gmra.mrb[8].mxu1 %v2754_v55  ;;  %v2435_v35 = vld [vmem:[#allocation5 + $0x454] ss:$12 sps:$4 sm:$0xff]  }
  0xb3   :  { %1632 = vmatpush1.bf16.msra.mxu1 %v2439_v56 }
  0xb4   :  { %1633 = vmatprep.subr.bf16.mxu1 %v2444_v58  ;;  %v2483_v58 = vld [vmem:[#allocation7 + $0xe4] ss:$8 sps:$4 sm:$0xff]  }
  0xb5   :  { %1144 = vmatpush1.bf16.msra.mxu0 %v2341_v36  ;;  %v2433_v36 = vld [vmem:[#allocation5 + $0x450] ss:$12 sps:$4 sm:$0xff]  }
  0xb6   :  { %1145 = vmatprep.subr.bf16.mxu0 %v2348_v40  ;;  %v2462_v40 = vld [vmem:[#allocation7 + $0x74] ss:$8 sps:$4 sm:$0xff]  }
  0xb7   :  { %1634 = vmatpush1.bf16.msra.mxu1 %v2442_v59  ;;  %v2481_v59 = vld [vmem:[#allocation7 + $0xe0] ss:$8 sps:$4 sm:$0xff]  }
  0xb8   :  { %1635 = vmatprep.subr.bf16.mxu1 %v2447_v61  ;;  %v2484_v61 = vld [vmem:[#allocation7 + $0xf0] ss:$8 sps:$4 sm:$0xff]  }
  0xb9   :  { %1146 = vmatpush1.bf16.msra.mxu0 %v2346_v43  ;;  %v2468_v43 = vld [vmem:[#allocation7 + $0x94] ss:$8 sps:$4 sm:$0xff]  }
  0xba   :  { %1147 = vmatprep.subr.bf16.mxu0 %v2353_v45  ;;  %v2471_v45 = vld [vmem:[#allocation7 + $0xa4] ss:$8 sps:$4 sm:$0xff]  }
  0xbb   :  { %1636 = vmatpush1.bf16.msra.mxu1 %v2445_v63  ;;  %v278_v63 = vlaneseq }
  0xbc   :  { %1637 = vmatprep.subr.bf16.mxu1 %v2450_v2  ;;  %v276_v2 = vld [vmem:[%s2787_s2] sm:$0x7] }
  0xbd   :  { %1148 = vmatpush1.bf16.msra.mxu0 %v2351_v47  ;;  %v2474_v47 = vld [vmem:[#allocation7 + $0xb4] ss:$8 sps:$4 sm:$0xff]  }
  0xbe   :  { %1149 = vmatprep.subr.bf16.mxu0 %v2358_v49  ;;  %v2477_v49 = vld [vmem:[#allocation7 + $0xc4] ss:$8 sps:$4 sm:$0xff]  }
  0xbf   :  { %1638 = vmatpush1.bf16.msra.mxu1 %v2448_v3 }
  0xc0   :  { %1639 = vmatprep.subr.bf16.mxu1 %v2453_v5 }
  0xc1   :  { %1150 = vmatpush1.bf16.msra.mxu0 %v2356_v51  ;;  %v2480_v51 = vld [vmem:[#allocation7 + $0xd4] ss:$8 sps:$4 sm:$0xff]  }
  0xc2   :  { %1151 = vmatprep.subr.bf16.mxu0 %v2363_v53 }
  0xc3   :  { %1640 = vmatpush1.bf16.msra.mxu1 %v2451_v7 }
  0xc4   :  { %1641 = vmatprep.subr.bf16.mxu1 %v2456_v15  ;;  %v2515_v15 = vld [vmem:[#allocation8 + $0x50] sm:$0xff]  }
  0xc5   :  { %1152 = vmatpush1.bf16.msra.mxu0 %v2361_v54 }
  0xc6   :  { %1153 = vmatprep.subr.bf16.mxu0 %v2368_v57 }
  0xc7   :  { %1642 = vmatpush1.bf16.msra.mxu1 %v2454_v14  ;;  %v2514_v14 = vld [vmem:[#allocation8 + $0x8] sm:$0xff]  }
  0xc8   :  { %1643 = vmatprep.subr.bf16.mxu1 %v2459_v33 }
  0xc9   :  { %1154 = vmatpush1.bf16.msra.mxu0 %v2366_v60  ;;  %v2486_v60 = vld [vmem:[#allocation7 + $0xf4] ss:$8 sps:$4 sm:$0xff]  }
  0xca   :  { %1164 = vmatprep.subr.bf16.mxu0 %v2375_v62  ;;  %v2489_v62 = vld [vmem:[#allocation7 + $0x104] ss:$8 sps:$4 sm:$0xff]  }
  0xcb   :  { %1644 = vmatpush1.bf16.msra.mxu1 %v2457_v32 }
  0xcc   :  { %1156 = vmatmul.mubr.bf16.vlgmr.msra.gmra.mrb[0].mxu0 %v2751_v21  ;;  %v2415_v21 = vld [vmem:[#allocation5 + $0x3c4] ss:$12 sps:$4 sm:$0xff]   ;;  %1645 = vmatprep.subr.bf16.mxu1 %v2462_v40 }
  0xcd   :  { %1165 = vmatpush1.bf16.msra.mxu0 %v2373_v0  ;;  %1196 = vmatprep.mubr.bf16.mxu0 %v1915_v41  ;;  %v2465_v41 = vld [vmem:[#allocation7 + $0x84] ss:$8 sps:$4 sm:$0xff]   ;;  %v2759_v0 = vshrl.u32 %v278_v63, 7  ;;  %v2525_v63 = vld [vmem:[#allocation8 + $0x78] sm:$0xff]  }
  0xce   :  { %1166 = vmatprep.subr.bf16.mxu0 %v2380_v1 }
  0xcf   :  { %1646 = vmatpush1.bf16.msra.mxu1 %v2460_v39  ;;  %v288_v1 = vsub.s32 2, %v2759_v0 }
  0xd0   :  { %1647 = vmatprep.subr.bf16.mxu1 %v2465_v41 }
  0xd1   :  { %1167 = vmatpush1.bf16.msra.mxu0 %v2378_v4  ;;  %v289_v3 = vrot.slane %v276_v2, %v288_v1  ;;  %v1379_v1 = vld [vmem:[%s2789_s4] sm:$0x3]  ;;  %s2656_s4 = smov [#allocation10]  }
  0xd2   :  { %1168 = vmatprep.subr.bf16.mxu0 %v2385_v6  ;;  %s1899_s9 = sshll.u32 %s2656_s4, 4  ;;  %s1900_s9 = int_to_ptr.vmem [resolvable:$true] %s1899_s9 }
  0xd3   :  { %1648 = vmatpush1.bf16.msra.mxu1 %v2463_v42  ;;  %v2487_v42 = vld [vmem:[#allocation7 + $0x100] ss:$8 sps:$4 sm:$0xff]   ;;  %s2615_s10 = scalar_lea.vmem %s1900_s9, 128  ;;  %p2620_p5 = scmp.lt.s32.totalorder %s1900_s9, %s1900_s9 }
  0xd4   :  { %1649 = vmatprep.subr.bf16.mxu1 %v2468_v43  ;;  %p2616_p4 = scmp.ne.s32.totalorder %s1900_s9, %s2615_s10  ;;  %p2621_p6 = scmp.lt.s32.totalorder %s2615_s10, %s2615_s10 }
  0xd5   :  { %1169 = vmatpush1.bf16.msra.mxu0 %v2383_v8 }
  0xd6   :  { %1170 = vmatprep.subr.bf16.mxu0 %v2390_v9  ;;  %p2622_p7 = por %p2621_p6, %p2620_p5 }
  0xd7   :  { %1650 = vmatpush1.bf16.msra.mxu1 %v2466_v44  ;;  %v2492_v44 = vld [vmem:[#allocation7 + $0x114] ss:$8 sps:$4 sm:$0xff]  }
  0xd8   :  { %1651 = vmatprep.subr.bf16.mxu1 %v2471_v45  ;;  %v2490_v45 = vld [vmem:[#allocation7 + $0x110] ss:$8 sps:$4 sm:$0xff]   ;;  %p2623_p8 = pnand %p2622_p7, %p2616_p4 }
  0xd9   :  { %1171 = vmatpush1.bf16.msra.mxu0 %v2388_v10 }
  0xda   :  { %1172 = vmatprep.subr.bf16.mxu0 %v2395_v11  ;;  %v2511_v11 = vld [vmem:[#allocation8 + $0x40] sm:$0xff]  }
  0xdb   :  { %1652 = vmatpush1.bf16.msra.mxu1 %v2469_v46  ;;  %v2655_v46 = vmov 0  }
  0xdc   :  { %1653 = vmatprep.subr.bf16.mxu1 %v2474_v47  ;;  %v2495_v47 = vld [vmem:[#allocation7 + $0x124] ss:$8 sps:$4 sm:$0xff]  }
  0xdd   :  { %1173 = vmatpush1.bf16.msra.mxu0 %v2393_v12  ;;  %v2512_v12 = vld [vmem:[#allocation8] sm:$0xff]  }
  0xde   :  { %1174 = vmatprep.subr.bf16.mxu0 %v2400_v13  ;;  %v2513_v13 = vld [vmem:[#allocation8 + $0x48] sm:$0xff]  }
  0xdf   :  { %1654 = vmatpush1.bf16.msra.mxu1 %v2472_v48  ;;  %v2493_v48 = vld [vmem:[#allocation7 + $0x120] ss:$8 sps:$4 sm:$0xff]  }
  0xe0   :  { %1655 = vmatprep.subr.bf16.mxu1 %v2477_v49  ;;  %v2498_v49 = vld [vmem:[#allocation7 + $0x134] ss:$8 sps:$4 sm:$0xff]  }
  0xe1   :  { %1175 = vmatpush1.bf16.msra.mxu0 %v2398_v16  ;;  %v2516_v16 = vld [vmem:[#allocation8 + $0x10] sm:$0xff]  }
  0xe2   :  { %1176 = vmatprep.subr.bf16.mxu0 %v2405_v17  ;;  %v2517_v17 = vld [vmem:[#allocation8 + $0x58] sm:$0xff]  }
  0xe3   :  { %1656 = vmatpush1.bf16.msra.mxu1 %v2475_v50  ;;  %v2496_v50 = vld [vmem:[#allocation7 + $0x130] ss:$8 sps:$4 sm:$0xff]  }
  0xe4   :  { %1657 = vmatprep.subr.bf16.mxu1 %v2480_v51  ;;  %v2501_v51 = vld [vmem:[#allocation7 + $0x144] ss:$8 sps:$4 sm:$0xff]  }
  0xe5   :  { %1177 = vmatpush1.bf16.msra.mxu0 %v2403_v18  ;;  %v2518_v18 = vld [vmem:[#allocation8 + $0x18] sm:$0xff]  }
  0xe6   :  { %1178 = vmatprep.subr.bf16.mxu0 %v2410_v19  ;;  %v2519_v19 = vld [vmem:[#allocation8 + $0x60] sm:$0xff]  }
  0xe7   :  { %1658 = vmatpush1.bf16.msra.mxu1 %v2478_v52  ;;  %v2499_v52 = vld [vmem:[#allocation7 + $0x140] ss:$8 sps:$4 sm:$0xff]  }
  0xe8   :  { %1659 = vmatprep.subr.bf16.mxu1 %v2483_v58  ;;  %v2508_v58 = vld [vmem:[#allocation7 + $0x170] ss:$8 sps:$4 sm:$0xff]  }
  0xe9   :  { %1179 = vmatpush1.bf16.msra.mxu0 %v2408_v20 }
  0xea   :  { %1180 = vmatprep.subr.bf16.mxu0 %v2415_v21 }
  0xeb   :  { %1660 = vmatpush1.bf16.msra.mxu1 %v2481_v59 }
  0xec   :  { %1661 = vmatprep.subr.bf16.mxu1 %v2486_v60 }
  0xed   :  { %1181 = vmatpush1.bf16.msra.mxu0 %v2413_v22  ;;  %v2520_v22 = vld [vmem:[#allocation8 + $0x20] sm:$0xff]  }
  0xee   :  { %1182 = vmatprep.subr.bf16.mxu0 %v2420_v23 }
  0xef   :  { %1662 = vmatpush1.bf16.msra.mxu1 %v2484_v61  ;;  %v2523_v61 = vld [vmem:[#allocation8 + $0x70] sm:$0xff]  }
  0xf0   :  { %1672 = vmatprep.subr.bf16.mxu1 %v2489_v62  ;;  %v2524_v62 = vld [vmem:[#allocation8 + $0x30] sm:$0xff]  }
  0xf1   :  { %1183 = vmatpush1.bf16.msra.mxu0 %v2418_v24 }
  0xf2   :  { %1184 = vmatprep.subr.bf16.mxu0 %v2423_v25  ;;  %v2521_v25 = vld [vmem:[#allocation8 + $0x68] sm:$0xff]  }
  0xf5   :  { %1185 = vmatpush1.bf16.msra.mxu0 %v2421_v26 }
  0xf6   :  { %1186 = vmatprep.subr.bf16.mxu0 %v2426_v27 }
  0xf9   :  { %1187 = vmatpush1.bf16.msra.mxu0 %v2424_v28  ;;  %v2522_v28 = vld [vmem:[#allocation8 + $0x28] sm:$0xff]  }
  0xfa   :  { %1188 = vmatprep.subr.bf16.mxu0 %v2429_v29  ;;  %v280_v29 = vsub.s32 0, %v2759_v0 }
  0xfd   :  { %1189 = vmatpush1.bf16.msra.mxu0 %v2427_v30  ;;  %v284_v30 = vsub.s32 1, %v2759_v0  ;;  %v2526_v0 = vld [vmem:[#allocation8 + $0x38] sm:$0xff]  }
  0xfe   :  { %1190 = vmatprep.subr.bf16.mxu0 %v2432_v31  ;;  %v281_v31 = vrot.slane %v276_v2, %v280_v29 }
  0xff   :  { %v285_v32 = vrot.slane %v276_v2, %v284_v30  ;;  %v1384_v2 = vrot.slane %v1379_v1, %v280_v29 }
 0x101   :  { %1191 = vmatpush1.bf16.msra.mxu0 %v2430_v34 }
 0x102   :  { %1192 = vmatprep.subr.bf16.mxu0 %v2435_v35 }
 0x105   :  { %1193 = vmatpush1.bf16.msra.mxu0 %v2433_v36 }
 0x106   :  { %1194 = vmatprep.subr.bf16.mxu0 %v2438_v37 }
 0x109   :  { %1195 = vmatpush1.bf16.msra.mxu0 %v2436_v38 }
 0x10a   :  { %2191 = vmatprep.subr.bf16.mxu0 %v2511_v11 }
 0x10c   :  { %1197 = vmatmul.mubr.bf16.vlgmr.msra.gmra.mrb[0].mxu0 %v2754_v55 }
 0x10d   :  { %2192 = vmatpush3.bf16.msra.mxu0 %v2512_v12 }
 0x10e   :  { %2193 = vmatprep.subr.bf16.mxu0 %v2513_v13 }
 0x111   :  { %2194 = vmatpush3.bf16.msra.mxu0 %v2514_v14 }
 0x112   :  { %2195 = vmatprep.subr.bf16.mxu0 %v2515_v15  ;;  %v2108_v15 = vld [vmem:[%s2791_s6] ss:$0 sm:$0xff] }
 0x115   :  { %2196 = vmatpush3.bf16.msra.mxu0 %v2516_v16 }
 0x116   :  { %2197 = vmatprep.subr.bf16.mxu0 %v2517_v17 }
 0x119   :  { %2198 = vmatpush3.bf16.msra.mxu0 %v2518_v18 }
 0x11a   :  { %2199 = vmatprep.subr.bf16.mxu0 %v2519_v19 }
 0x11d   :  { %2200 = vmatpush3.bf16.msra.mxu0 %v2520_v22 }
 0x11e   :  { %2201 = vmatprep.subr.bf16.mxu0 %v2521_v25 }
 0x121   :  { %2202 = vmatpush3.bf16.msra.mxu0 %v2522_v28 }
 0x122   :  { %2203 = vmatprep.subr.bf16.mxu0 %v2523_v61 }
 0x125   :  { %2204 = vmatpush3.bf16.msra.mxu0 %v2524_v62 }
 0x126   :  { %2205 = vmatprep.subr.bf16.mxu0 %v2525_v63 }
 0x129   :  { %2206 = vmatpush3.bf16.msra.mxu0 %v2526_v0 }
 0x145   :  { %v2141_v53 = vpop.f32.mrb[0].mxu1 }
 0x146   :  { %v2142_v54 = vpop.f32.mrb[1].mxu1 }
 0x147   :  { %v2143_v55 = vadd.f32 %v2142_v54, %v2141_v53  ;;  %v2144_v56 = vpop.f32.mrb[2].mxu1  ;;  %v2504_v53 = vld [vmem:[#allocation7 + $0x154] ss:$8 sps:$4 sm:$0xff]   ;;  %v2502_v54 = vld [vmem:[#allocation7 + $0x150] ss:$8 sps:$4 sm:$0xff]  }
 0x148   :  { %v2145_v57 = vpop.f32.mrb[3].mxu1  ;;  %v2505_v56 = vld [vmem:[#allocation7 + $0x160] ss:$8 sps:$4 sm:$0xff]  }
 0x149   :  { %v1240_v4 = vadd.f32 %v2143_v55, %v289_v3  ;;  %v2507_v55 = vld [vmem:[#allocation7 + $0x164] ss:$8 sps:$4 sm:$0xff]   ;;  %v2510_v57 = vld [vmem:[#allocation7 + $0x174] ss:$8 sps:$4 sm:$0xff]   ;;  %v1388_v3 = vrot.slane %v1379_v1, %v284_v30 }
 0x165   :  { %v2163_v5 = vpop.f32.mrb[4].mxu1 }
 0x166   :  { %v2164_v6 = vpop.f32.mrb[5].mxu1 }
 0x167   :  { %v2165_v7 = vadd.f32 %v2164_v6, %v2163_v5  ;;  %v2166_v8 = vpop.f32.mrb[6].mxu1 }
 0x168   :  { %v2167_v9 = vpop.f32.mrb[7].mxu1 }
 0x169   :  { %v1280_v10 = vadd.f32 %v2165_v7, %v1240_v4 }
 0x185   :  { %v2185_v20 = vpop.f32.mrb[8].mxu1 }
 0x186   :  { %v2186_v21 = vpop.f32.mrb[9].mxu1 }
 0x187   :  { %v2187_v23 = vadd.f32 %v2186_v21, %v2185_v20  ;;  %v2188_v24 = vpop.f32.mrb[10].mxu1 }
 0x188   :  { %v2189_v26 = vpop.f32.mrb[11].mxu1 }
 0x189   :  { %v1320_v27 = vadd.f32 %v2187_v23, %v1280_v10 }
 0x18b   :  { %v1327_v59 = vmax.f32 %v1320_v27, 0.0 }
 0x18d   :  { %v1330_v60 = vpack.c.bf16 %v1327_v59, %v1327_v59 }
 0x1df   :  { %v1198_v33 = vpop.f32.mrb[0].mxu0 }
 0x1e0   :  { %v2213_v34 = vadd.f32 %v1198_v33, %v281_v31  ;;  %v1200_v35 = vpop.f32.mrb[1].mxu0 }
 0x1e1   :  { %v2214_v36 = vadd.f32 %v1200_v35, %v285_v32  ;;  %v1202_v37 = vpop.f32.mrb[2].mxu0 }
 0x1e2   :  { %v1325_v38 = vmax.f32 %v2213_v34, 0.0  ;;  %v1203_v39 = vpop.f32.mrb[3].mxu0 }
 0x1e3   :  { %v1326_v40 = vmax.f32 %v2214_v36, 0.0 }
 0x1e4   :  { %v1328_v43 = vpack.c.bf16 %v1325_v38, %v1325_v38 }
 0x1e5   :  { %v1329_v41 = vpack.c.bf16 %v1326_v40, %v1326_v40 }
 0x1e7   :  { %1663 = vmatprep.mubr.bf16.mxu1 %v1329_v41 }
 0x1e8   :  { %1664 = vmatmul.mubr.bf16.vlgmr.msra.gmra.mrb[12].mxu1 %v1328_v43 }
 0x1e9   :  { %1673 = vmatpush1.bf16.msra.mxu1 %v2487_v42  ;;  %1704 = vmatprep.mubr.bf16.mxu1 %v2655_v46 }
 0x1ea   :  { %1674 = vmatprep.subr.bf16.mxu1 %v2492_v44 }
 0x1ed   :  { %1675 = vmatpush1.bf16.msra.mxu1 %v2490_v45 }
 0x1ee   :  { %1676 = vmatprep.subr.bf16.mxu1 %v2495_v47 }
 0x1f1   :  { %1677 = vmatpush1.bf16.msra.mxu1 %v2493_v48 }
 0x1f2   :  { %1678 = vmatprep.subr.bf16.mxu1 %v2498_v49 }
 0x1f5   :  { %1679 = vmatpush1.bf16.msra.mxu1 %v2496_v50 }
 0x1f6   :  { %1680 = vmatprep.subr.bf16.mxu1 %v2501_v51 }
 0x1f9   :  { %1681 = vmatpush1.bf16.msra.mxu1 %v2499_v52 }
 0x1fa   :  { %1682 = vmatprep.subr.bf16.mxu1 %v2504_v53 }
 0x1fd   :  { %1683 = vmatpush1.bf16.msra.mxu1 %v2502_v54 }
 0x1fe   :  { %1684 = vmatprep.subr.bf16.mxu1 %v2507_v55 }
 0x201   :  { %1685 = vmatpush1.bf16.msra.mxu1 %v2505_v56 }
 0x202   :  { %1686 = vmatprep.subr.bf16.mxu1 %v2510_v57 }
 0x205   :  { %1687 = vmatpush1.bf16.msra.mxu1 %v2508_v58 }
 0x208   :  { %1705 = vmatmul.mubr.bf16.vlgmr.msra.gmra.mrb[12].mxu1 %v1330_v60 }
 0x2db   :  { %v1706_v4 = vpop.f32.mrb[12].mxu1 }
 0x2dc   :  { %v2215_v5 = vadd.f32 %v1706_v4, %v1384_v2  ;;  %v1708_v6 = vpop.f32.mrb[13].mxu1 }
 0x2dd   :  { %v2216_v7 = vadd.f32 %v1708_v6, %v1388_v3  ;;  %v1710_v8 = vpop.f32.mrb[14].mxu1 }
 0x2de   :  { %v1713_v9 = vmax.f32 %v2215_v5, 0.0  ;;  %v1711_v10 = vpop.f32.mrb[15].mxu1 }
 0x2df   :  { %v1714_v11 = vmax.f32 %v2216_v7, 0.0 }
 0x2e0   :  { %v1715_v13 = vpack.c.bf16 %v1713_v9, %v1713_v9 }
 0x2e1   :  { %v1716_v12 = vpack.c.bf16 %v1714_v11, %v1714_v11 }
 0x2e3   :  { %1884 = vmatprep.mubr.bf16.mxu0 %v1716_v12 }
 0x2e4   :  { %1885 = vmatmul.mubr.bf16.vlgmr.msra.gmra.mrb[4].mxu0 %v1715_v13 }
 0x3b7   :  { %v2207_v14 = vpop.f32.mrb[4].mxu0 }
 0x3b8   :  { %v2208_v16 = vpop.f32.mrb[5].mxu0 }
 0x3b9   :  { %v2209_v17 = vadd.f32 %v2208_v16, %v2207_v14  ;;  %v2210_v18 = vpop.f32.mrb[6].mxu0 }
 0x3ba   :  { %v2211_v19 = vpop.f32.mrb[7].mxu0 }
 0x3bb   :  { %v1887_v20 = vadd.f32 %v2209_v17, %v2108_v15 }
 0x3bd   :  { %1892 = vst [vmem:[#allocation10] sm:$0xff] %v1887_v20 }
 0x3be   :  { %2626 = shalt.err (!%p2623_p8)
}
 0x3bf   :  { %s2627_s6 = scalar_lea.hbm %s2792_s7, 128 }
 0x3c0   :  { %p2628_p9 = scmp.ne.s32.totalorder %s2792_s7, %s2627_s6  ;;  %p2631_p10 = scmp.lt.u32.totalorder %s2627_s6, %s2792_s7 }
 0x3c2   :  { %p2633_p11 = pnand %p2631_p10, %p2628_p9 }
 0x3c4   :  { %2636 = shalt.err (!%p2633_p11)
}
 0x3c5   :  { %1902 = dma.vmem_to_hbm [thread:$0]  %s1900_s9, 128, %s2792_s7, [#allocation4]  }
 0x3c6   :  { %2643 = dma.done.wait [#allocation4], 128  }
 0x3c7   :  { %2644 = vsyncadd [#allocation4], 4294967168 }
 0x3c8   :  { %1906 = vsyncpa [#allocation3], 1 }
 0x3c9   :  { %1907 = vsyncpa [#allocation6], 1 }
 0x3ca   :  { %1908 = vsyncpa [#allocation9], 1 }
 0x3cb   :  { %1909 = vsyncpa [#allocation4], 1 }

</bundles_post_ra>
